<compile_context>
chip_gen: v7x
topology: tpu7x:2x2x1
jax: 0.10.0
libtpu: 0.0.40
codegen_flags: <defaults>
</compile_context>

<pallas_src>
import functools
import math

import jax
import jax.numpy as jnp
from jax.experimental import pallas as pl
from jax.experimental.pallas import tpu as pltpu


def _round_up(x: int, m: int) -> int:
    return ((x + m - 1) // m) * m


# ---------------------------------------------------------------------------
# Parameter packing (ensemble fusion)
# ---------------------------------------------------------------------------
def _pack_params(params):
    """Fuse per-critic weights so the kernel runs one big matmul chain."""
    (w1, b1), (w2, b2), (w3, b3), (w4, b4) = params
    E, S, H = w1.shape
    A = w4.shape[-1]
    eye = jnp.eye(E, dtype=jnp.float32)

    def block_diag(w):                    # [E, fin, fout] -> [E*fin, E*fout]
        _, fin, fout = w.shape
        return (eye[:, None, :, None] * w[:, :, None, :]).reshape(E * fin, E * fout)

    bf16 = jnp.bfloat16
    w1f = jnp.transpose(w1, (1, 0, 2)).reshape(S, E * H).astype(bf16)   # col = e*H + h
    b1f = b1.reshape(1, E * H)
    w2f = block_diag(w2).astype(bf16)
    b2f = b2.reshape(1, E * H)
    w3f = block_diag(w3).astype(bf16)
    b3f = b3.reshape(1, E * H)
    w4f = block_diag(w4).astype(bf16)                                   # col = e*A + a
    b4f = b4.reshape(1, E * A)

    packed = (w1f, b1f, w2f, b2f, w3f, b3f, w4f, b4f)
    dims = dict(E=E, S=S, H=H, A=A)
    return packed, dims


# ---------------------------------------------------------------------------
# Kernel: one batch tile, all critics fused
# ---------------------------------------------------------------------------
def _critic_kernel(state_ref,
                   w1_ref, b1_ref,
                   w2_ref, b2_ref,
                   w3_ref, b3_ref,
                   w4_ref, b4_ref,
                   out_ref):
    """state_ref: [B_blk, S] f32; weights bf16 (packed); out_ref: [B_blk, E*A] f32."""
    bf16 = jnp.bfloat16

    # layer 1 (fused over the ensemble): [B_blk, S] @ [S, E*H]
    h = jnp.dot(state_ref[...].astype(bf16), w1_ref[...],
                preferred_element_type=jnp.float32) + b1_ref[...]
    h = jnp.maximum(h, 0.0)

    # layer 2 (block-diagonal over critics): [B_blk, E*H] @ [E*H, E*H]
    h = jnp.dot(h.astype(bf16), w2_ref[...],
                preferred_element_type=jnp.float32) + b2_ref[...]
    h = jnp.maximum(h, 0.0)

    # layer 3
    h = jnp.dot(h.astype(bf16), w3_ref[...],
                preferred_element_type=jnp.float32) + b3_ref[...]
    h = jnp.maximum(h, 0.0)

    # layer 4 (block-diagonal), no activation
    q = jnp.dot(h.astype(bf16), w4_ref[...],
                preferred_element_type=jnp.float32) + b4_ref[...]

    out_ref[...] = q


# ---------------------------------------------------------------------------
# Wrapper
# ---------------------------------------------------------------------------
def _choose_batch_block(B: int, requested) -> int:
    """Large batch tiles (step-overhead amortization) but grid length >= 2."""
    B8 = _round_up(max(B, 1), 8)
    if requested is None:
        blk = min(2048, _round_up(pl.cdiv(B8, 2), 8))   # ~2 tiles, <= 2048 rows
    else:
        blk = _round_up(min(int(requested), B8), 8)
    return max(8, blk)


@functools.partial(jax.jit, static_argnames=("batch_block",))
def vectorized_critic_forward(state, params, *, batch_block=None):
    """state: [B, state_dim] f32 -> q: [num_critics, B, action_dim]
    (last axis squeezed iff action_dim == 1, matching torch .squeeze(-1))."""
    packed, d = _pack_params(params)
    w1f, b1f, w2f, b2f, w3f, b3f, w4f, b4f = packed
    E, S, H, A = d["E"], d["S"], d["H"], d["A"]
    EH, EA = E * H, E * A

    B = state.shape[0]
    B_blk = _choose_batch_block(B, batch_block)
    B_pad = pl.cdiv(B, B_blk) * B_blk
    if B_pad != B:
        state = jnp.pad(state, ((0, B_pad - B), (0, 0)))

    grid = (B_pad // B_blk,)

    # Constant-index weights: single-buffered, VMEM-resident across batch tiles.
    def _resident(shape):
        return pl.BlockSpec(shape, lambda b: (0, 0), pipeline_mode=pl.Buffered(1))

    grid_spec = pltpu.PrefetchScalarGridSpec(
        num_scalar_prefetch=0,
        grid=grid,
        in_specs=[
            pl.BlockSpec((B_blk, S), lambda b: (b, 0)),   # state tile (pipelined)
            _resident((S, EH)),                           # fused W1
            _resident((1, EH)),                           # fused b1
            _resident((EH, EH)),                          # block-diag W2
            _resident((1, EH)),
            _resident((EH, EH)),                          # block-diag W3
            _resident((1, EH)),
            _resident((EH, EA)),                          # block-diag W4 (unpadded)
            _resident((1, EA)),
        ],
        out_specs=pl.BlockSpec((B_blk, EA), lambda b: (b, 0)),
    )

    # VMEM footprint estimate; only raise the scoped limit when needed
    # (v5e default 16 MiB; v7x physical VMEM is 64 MiB, so cap there).
    est_vmem = (
        2 * (S * EH + 2 * EH * EH + EH * EA) + 4 * (3 * EH + EA)   # resident weights/biases
        + 2 * B_blk * S * 4 + 2 * B_blk * EA * 4                   # double-buffered I/O
        + 6 * B_blk * EH * 4                                       # live activation slabs
    )
    compiler_kwargs = dict(dimension_semantics=("parallel",))
    if est_vmem > 12 * 1024 * 1024:
        compiler_kwargs["vmem_limit_bytes"] = int(
            min(max(2 * est_vmem, 32 * 1024 * 1024), 64 * 1024 * 1024))

    q_flat = pl.pallas_call(
        _critic_kernel,
        out_shape=jax.ShapeDtypeStruct((B_pad, EA), jnp.float32),
        grid_spec=grid_spec,
        compiler_params=pltpu.CompilerParams(**compiler_kwargs),
    )(state, w1f, b1f, w2f, b2f, w3f, b3f, w4f, b4f)

    # Epilogue fused by jit: slice padding, split critics, put ensemble first.
    q = q_flat[:B].reshape(B, E, A)
    q = jnp.transpose(q, (1, 0, 2))                       # -> [E, B, A]
    if A == 1:                                            # torch .squeeze(-1)
        q = jnp.squeeze(q, axis=-1)
    return q


# ---------------------------------------------------------------------------
# Parameter init (mirrors the module's __init__ closely enough for the test)
# ---------------------------------------------------------------------------
def init_params(key, state_dim, action_dim, hidden_dim, num_critics):
    dims = [(state_dim, hidden_dim),
            (hidden_dim, hidden_dim),
            (hidden_dim, hidden_dim),
            (hidden_dim, action_dim)]
    params = []
    for li, (fin, fout) in enumerate(dims):
        key, kw, kb = jax.random.split(key, 3)
        if li < 3:
            bound = 1.0 / math.sqrt(fin)
            w = jax.random.uniform(kw, (num_critics, fin, fout),
                                   jnp.float32, -bound, bound)
            b = jnp.full((num_critics, 1, fout), 0.1, jnp.float32)   # constant_(bias, 0.1)
        else:
            w = jax.random.uniform(kw, (num_critics, fin, fout),
                                   jnp.float32, -0.003, 0.003)
            b = jax.random.uniform(kb, (num_critics, 1, fout),
                                   jnp.float32, -0.003, 0.003)
        params.append((w, b))
    return params


# ---------------------------------------------------------------------------
# References
# ---------------------------------------------------------------------------
def reference_forward_f32(state, params):
    """Pure-JAX f32 reference of the torch forward pass."""
    E = params[0][0].shape[0]
    x = jnp.broadcast_to(state[None], (E,) + state.shape)   # repeat_interleave(dim=0)
    for i, (w, b) in enumerate(params):
        x = jnp.einsum('ebi,eio->ebo', x, w) + b
        if i < len(params) - 1:
            x = jnp.maximum(x, 0.0)
    if x.shape[-1] == 1:
        x = jnp.squeeze(x, axis=-1)
    return x


def reference_forward_packed(state, params):
    """Pure-JAX reference with the SAME packing / bf16-operand precision as the kernel."""
    packed, d = _pack_params(params)
    w1f, b1f, w2f, b2f, w3f, b3f, w4f, b4f = packed
    E, A = d["E"], d["A"]
    bf16 = jnp.bfloat16

    h = jnp.dot(state.astype(bf16), w1f, preferred_element_type=jnp.float32) + b1f
    h = jnp.maximum(h, 0.0)
    h = jnp.dot(h.astype(bf16), w2f, preferred_element_type=jnp.float32) + b2f
    h = jnp.maximum(h, 0.0)
    h = jnp.dot(h.astype(bf16), w3f, preferred_element_type=jnp.float32) + b3f
    h = jnp.maximum(h, 0.0)
    q = jnp.dot(h.astype(bf16), w4f, preferred_element_type=jnp.float32) + b4f

    B = state.shape[0]
    q = q.reshape(B, E, A).transpose(1, 0, 2)
    if A == 1:
        q = jnp.squeeze(q, axis=-1)
    return q


if __name__ == "__main__":
    state_dim, action_dim, hidden_dim, num_critics = 16, 8, 32, 4
    batch = 64

    key = jax.random.PRNGKey(0)
    key, ks = jax.random.split(key)
    state = jax.random.normal(ks, (batch, state_dim), jnp.float32)
    params = init_params(key, state_dim, action_dim, hidden_dim, num_critics)

    # Default tiling: B_blk = 32 -> grid = (2,), exercising the parallel axis.
    q = vectorized_critic_forward(state, params)
    q = jax.block_until_ready(q)
    assert q.shape == (num_critics, batch, action_dim), q.shape

    # Same-precision reference (same packing + bf16 matmul operands): tight match.
    q_ref_bf16 = reference_forward_packed(state, params)
    assert jnp.allclose(q, q_ref_bf16, atol=1e-4, rtol=1e-4), \
        "mismatch vs same-precision packed reference"

    # Full-f32 reference of the torch module: bf16 MXU operands -> relaxed tolerance.
    q_ref_f32 = reference_forward_f32(state, params)
    assert jnp.allclose(q, q_ref_f32, atol=2e-3, rtol=2e-2), \
        "mismatch vs f32 reference"

    # Ragged batch (exercises padding + slice epilogue).
    key, ks2 = jax.random.split(key)
    state2 = jax.random.normal(ks2, (37, state_dim), jnp.float32)
    q2 = jax.block_until_ready(vectorized_critic_forward(state2, params))
    q2_ref = reference_forward_packed(state2, params)
    assert q2.shape == (num_critics, 37, action_dim), q2.shape
    assert jnp.allclose(q2, q2_ref, atol=1e-4, rtol=1e-4), \
        "mismatch vs packed reference (ragged batch)"

    print("KERNEL_OK")
</pallas_src>

<mosaic_0001>
module attributes {stable_mosaic.version = 11 : i64} {
  func.func @_critic_kernel(%arg0: i32, %arg1: memref<32x16xf32, #tpu.memory_space<vmem>>, %arg2: memref<16x128xbf16, #tpu.memory_space<vmem>>, %arg3: memref<1x128xf32, #tpu.memory_space<vmem>>, %arg4: memref<128x128xbf16, #tpu.memory_space<vmem>>, %arg5: memref<1x128xf32, #tpu.memory_space<vmem>>, %arg6: memref<128x128xbf16, #tpu.memory_space<vmem>>, %arg7: memref<1x128xf32, #tpu.memory_space<vmem>>, %arg8: memref<128x32xbf16, #tpu.memory_space<vmem>>, %arg9: memref<1x32xf32, #tpu.memory_space<vmem>>, %arg10: memref<32x32xf32, #tpu.memory_space<vmem>>) attributes {dimension_semantics = [#tpu.dimension_semantics<parallel>], iteration_bounds = array<i64: 2>, scalar_prefetch = 0 : i64, scratch_operands = 0 : i64, tpu.core_type = #tpu.core_type<tc>, window_params = [{transform_indices = @transform_0, window_bounds = array<i64: 32, 16>}, {pipeline_mode = #tpu.pipeline_mode<synchronous>, transform_indices = @transform_1, window_bounds = array<i64: 16, 128>}, {pipeline_mode = #tpu.pipeline_mode<synchronous>, transform_indices = @transform_2, window_bounds = array<i64: 1, 128>}, {pipeline_mode = #tpu.pipeline_mode<synchronous>, transform_indices = @transform_3, window_bounds = array<i64: 128, 128>}, {pipeline_mode = #tpu.pipeline_mode<synchronous>, transform_indices = @transform_4, window_bounds = array<i64: 1, 128>}, {pipeline_mode = #tpu.pipeline_mode<synchronous>, transform_indices = @transform_5, window_bounds = array<i64: 128, 128>}, {pipeline_mode = #tpu.pipeline_mode<synchronous>, transform_indices = @transform_6, window_bounds = array<i64: 1, 128>}, {pipeline_mode = #tpu.pipeline_mode<synchronous>, transform_indices = @transform_7, window_bounds = array<i64: 128, 32>}, {pipeline_mode = #tpu.pipeline_mode<synchronous>, transform_indices = @transform_8, window_bounds = array<i64: 1, 32>}, {transform_indices = @transform_9, window_bounds = array<i64: 32, 32>}]} {
    %c0 = arith.constant 0 : index
    %c0_0 = arith.constant 0 : index
    %0 = vector.load %arg1[%c0, %c0_0] : memref<32x16xf32, #tpu.memory_space<vmem>>, vector<32x16xf32>
    %1 = arith.truncf %0 : vector<32x16xf32> to vector<32x16xbf16>
    %c0_1 = arith.constant 0 : index
    %c0_2 = arith.constant 0 : index
    %2 = vector.load %arg2[%c0_1, %c0_2] : memref<16x128xbf16, #tpu.memory_space<vmem>>, vector<16x128xbf16>
    %cst = arith.constant dense<0.000000e+00> : vector<32x128xf32>
    %3 = tpu.matmul %1, %2, %cst {dimension_numbers = #tpu.dot_dimension_numbers<[1], [0], [0], [1], [0, 0, 1, 1], [], []>} : vector<32x16xbf16>, vector<16x128xbf16>, vector<32x128xf32> -> vector<32x128xf32>
    %c0_3 = arith.constant 0 : index
    %c0_4 = arith.constant 0 : index
    %4 = vector.load %arg3[%c0_3, %c0_4] : memref<1x128xf32, #tpu.memory_space<vmem>>, vector<1x128xf32>
    %5 = vector.broadcast %4 : vector<1x128xf32> to vector<32x128xf32>
    %6 = arith.addf %3, %5 : vector<32x128xf32>
    %cst_5 = arith.constant 0.000000e+00 : f32
    %7 = vector.broadcast %cst_5 : f32 to vector<32x128xf32>
    %8 = arith.maximumf %6, %7 : vector<32x128xf32>
    %9 = arith.truncf %8 : vector<32x128xf32> to vector<32x128xbf16>
    %c0_6 = arith.constant 0 : index
    %c0_7 = arith.constant 0 : index
    %10 = vector.load %arg4[%c0_6, %c0_7] : memref<128x128xbf16, #tpu.memory_space<vmem>>, vector<128x128xbf16>
    %cst_8 = arith.constant dense<0.000000e+00> : vector<32x128xf32>
    %11 = tpu.matmul %9, %10, %cst_8 {dimension_numbers = #tpu.dot_dimension_numbers<[1], [0], [0], [1], [0, 0, 1, 1], [], []>} : vector<32x128xbf16>, vector<128x128xbf16>, vector<32x128xf32> -> vector<32x128xf32>
    %c0_9 = arith.constant 0 : index
    %c0_10 = arith.constant 0 : index
    %12 = vector.load %arg5[%c0_9, %c0_10] : memref<1x128xf32, #tpu.memory_space<vmem>>, vector<1x128xf32>
    %13 = vector.broadcast %12 : vector<1x128xf32> to vector<32x128xf32>
    %14 = arith.addf %11, %13 : vector<32x128xf32>
    %cst_11 = arith.constant 0.000000e+00 : f32
    %15 = vector.broadcast %cst_11 : f32 to vector<32x128xf32>
    %16 = arith.maximumf %14, %15 : vector<32x128xf32>
    %17 = arith.truncf %16 : vector<32x128xf32> to vector<32x128xbf16>
    %c0_12 = arith.constant 0 : index
    %c0_13 = arith.constant 0 : index
    %18 = vector.load %arg6[%c0_12, %c0_13] : memref<128x128xbf16, #tpu.memory_space<vmem>>, vector<128x128xbf16>
    %cst_14 = arith.constant dense<0.000000e+00> : vector<32x128xf32>
    %19 = tpu.matmul %17, %18, %cst_14 {dimension_numbers = #tpu.dot_dimension_numbers<[1], [0], [0], [1], [0, 0, 1, 1], [], []>} : vector<32x128xbf16>, vector<128x128xbf16>, vector<32x128xf32> -> vector<32x128xf32>
    %c0_15 = arith.constant 0 : index
    %c0_16 = arith.constant 0 : index
    %20 = vector.load %arg7[%c0_15, %c0_16] : memref<1x128xf32, #tpu.memory_space<vmem>>, vector<1x128xf32>
    %21 = vector.broadcast %20 : vector<1x128xf32> to vector<32x128xf32>
    %22 = arith.addf %19, %21 : vector<32x128xf32>
    %cst_17 = arith.constant 0.000000e+00 : f32
    %23 = vector.broadcast %cst_17 : f32 to vector<32x128xf32>
    %24 = arith.maximumf %22, %23 : vector<32x128xf32>
    %25 = arith.truncf %24 : vector<32x128xf32> to vector<32x128xbf16>
    %c0_18 = arith.constant 0 : index
    %c0_19 = arith.constant 0 : index
    %26 = vector.load %arg8[%c0_18, %c0_19] : memref<128x32xbf16, #tpu.memory_space<vmem>>, vector<128x32xbf16>
    %cst_20 = arith.constant dense<0.000000e+00> : vector<32x32xf32>
    %27 = tpu.matmul %25, %26, %cst_20 {dimension_numbers = #tpu.dot_dimension_numbers<[1], [0], [0], [1], [0, 0, 1, 1], [], []>} : vector<32x128xbf16>, vector<128x32xbf16>, vector<32x32xf32> -> vector<32x32xf32>
    %c0_21 = arith.constant 0 : index
    %c0_22 = arith.constant 0 : index
    %28 = vector.load %arg9[%c0_21, %c0_22] : memref<1x32xf32, #tpu.memory_space<vmem>>, vector<1x32xf32>
    %29 = vector.broadcast %28 : vector<1x32xf32> to vector<32x32xf32>
    %30 = arith.addf %27, %29 : vector<32x32xf32>
    %c0_23 = arith.constant 0 : index
    %c0_24 = arith.constant 0 : index
    %31 = vector.load %arg10[%c0_23, %c0_24] : memref<32x32xf32, #tpu.memory_space<vmem>>, vector<32x32xf32>
    tpu.vector_store %arg10[%c0_23, %c0_24], %30 {strides = array<i32>} : memref<32x32xf32, #tpu.memory_space<vmem>>, vector<32x32xf32>,
    return
  }
  func.func @transform_0(%arg0: i32) -> (i32, i32) {
    %c0_i32 = arith.constant 0 : i32
    %c0_i32_0 = arith.constant 0 : i32
    return %arg0, %c0_i32 : i32, i32
  }
  func.func @transform_1(%arg0: i32) -> (i32, i32) {
    %c0_i32 = arith.constant 0 : i32
    %c0_i32_0 = arith.constant 0 : i32
    %c0_i32_1 = arith.constant 0 : i32
    return %c0_i32, %c0_i32_0 : i32, i32
  }
  func.func @transform_2(%arg0: i32) -> (i32, i32) {
    %c0_i32 = arith.constant 0 : i32
    %c0_i32_0 = arith.constant 0 : i32
    %c0_i32_1 = arith.constant 0 : i32
    return %c0_i32, %c0_i32_0 : i32, i32
  }
  func.func @transform_3(%arg0: i32) -> (i32, i32) {
    %c0_i32 = arith.constant 0 : i32
    %c0_i32_0 = arith.constant 0 : i32
    %c0_i32_1 = arith.constant 0 : i32
    return %c0_i32, %c0_i32_0 : i32, i32
  }
  func.func @transform_4(%arg0: i32) -> (i32, i32) {
    %c0_i32 = arith.constant 0 : i32
    %c0_i32_0 = arith.constant 0 : i32
    %c0_i32_1 = arith.constant 0 : i32
    return %c0_i32, %c0_i32_0 : i32, i32
  }
  func.func @transform_5(%arg0: i32) -> (i32, i32) {
    %c0_i32 = arith.constant 0 : i32
    %c0_i32_0 = arith.constant 0 : i32
    %c0_i32_1 = arith.constant 0 : i32
    return %c0_i32, %c0_i32_0 : i32, i32
  }
  func.func @transform_6(%arg0: i32) -> (i32, i32) {
    %c0_i32 = arith.constant 0 : i32
    %c0_i32_0 = arith.constant 0 : i32
    %c0_i32_1 = arith.constant 0 : i32
    return %c0_i32, %c0_i32_0 : i32, i32
  }
  func.func @transform_7(%arg0: i32) -> (i32, i32) {
    %c0_i32 = arith.constant 0 : i32
    %c0_i32_0 = arith.constant 0 : i32
    %c0_i32_1 = arith.constant 0 : i32
    return %c0_i32, %c0_i32_0 : i32, i32
  }
  func.func @transform_8(%arg0: i32) -> (i32, i32) {
    %c0_i32 = arith.constant 0 : i32
    %c0_i32_0 = arith.constant 0 : i32
    %c0_i32_1 = arith.constant 0 : i32
    return %c0_i32, %c0_i32_0 : i32, i32
  }
  func.func @transform_9(%arg0: i32) -> (i32, i32) {
    %c0_i32 = arith.constant 0 : i32
    %c0_i32_0 = arith.constant 0 : i32
    return %arg0, %c0_i32 : i32, i32
  }
}

</mosaic_0001>

<bundles_post_ra>
// kernel: vectorized_critic_forward.1
= control target key start
LH: loop header
LB: loop body
LE: loop exit
PB: predicated region body
PF: predicated region fallthrough
CT: control target
= control target key end

     0   :  { %s1085_s30 = smov 0   ;;  %s1196_s0 = inlined_call_operand.vmem [shape: f32[64,16], index: 0, kind: input, shape index: {}]   ;;  %s1197_s1 = inlined_call_operand.vmem [shape: bf16[16,128], index: 1, kind: input, shape index: {}]   ;;  %s1198_s2 = inlined_call_operand.vmem [shape: f32[1,128], index: 2, kind: input, shape index: {}]   ;;  %s1199_s3 = inlined_call_operand.vmem [shape: bf16[128,128], index: 3, kind: input, shape index: {}]   ;;  %s1200_s4 = inlined_call_operand.vmem [shape: f32[1,128], index: 4, kind: input, shape index: {}]   ;;  %s1201_s5 = inlined_call_operand.vmem [shape: bf16[128,128], index: 5, kind: input, shape index: {}]   ;;  %s1202_s6 = inlined_call_operand.vmem [shape: f32[1,128], index: 6, kind: input, shape index: {}]   ;;  %s1203_s7 = inlined_call_operand.vmem [shape: bf16[128,32], index: 7, kind: input, shape index: {}]   ;;  %s1204_s8 = inlined_call_operand.vmem [shape: f32[1,32], index: 8, kind: input, shape index: {}]   ;;  %s1205_s9 = inlined_call_operand.vmem [shape: f32[64,32], index: 9, kind: output, shape index: {}]  }
   0x1 LB: > { %s853_s10 = sadd.s32 4294967295, %s1033_s30   ;;  %p857_p0 = scmp.ge.s32.totalorder %s1033_s30, 1  ;;  %s1033_s30 = sphi %s1085_s30, %s19_s30  }
   0x2   : > { %p288_p1 = scmp.lt.s32.totalorder %s1033_s30, 3 }
   0x4   : > { %p289_p2 = pnand %p857_p0, %p288_p1 }
   0x5   : > { %v1002_v0 = vld [vmem:[%s1197_s1] sm:$0xff] (!%p289_p2)   ;;  %s858_s13 = sshll.u32 (!%p289_p2), %s853_s10, 2  ;;  %v1004_v2 = vld [vmem:[%s1199_s3 + $0x8] sm:$0xff] (!%p289_p2)   ;;  %v1005_v3 = vld [vmem:[%s1199_s3 + $0x10] sm:$0xff] (!%p289_p2)   ;;  %vm358_vm0 = vcmask (!%p289_p2), 130048   ;;  %vm792_vm1 = vcmask (!%p289_p2), 261120  }
   0x6   : > { %292 = sbr.rel (%p289_p2) target bundleno = 904 (0x388), region = 56  ;;  %p325_p3 = scmp.lt.s32.totalorder (!%p289_p2), %s858_s13, 7  ;;  %928 = vmatprep.subr.bf16.mxu0 (!%p289_p2), %v1002_v0  ;;  %v1003_v1 = vld [vmem:[%s1199_s3] sm:$0xff] (!%p289_p2)   ;;  %v1006_v9 = vld [vmem:[%s1199_s3 + $0x18] sm:$0xff] (!%p289_p2)   ;;  %v1008_v12 = vld [vmem:[%s1199_s3 + $0x28] sm:$0xff] (!%p289_p2)  }
   0x7   : > { %929 = vmatpush3.bf16.msra.mxu0 (!%p289_p2), %v1002_v0  ;;  %934 = vmatprep.subr.bf16.mxu1 (!%p289_p2), %v1003_v1  ;;  %v1007_v11 = vld [vmem:[%s1199_s3 + $0x20] sm:$0xff] (!%p289_p2)   ;;  %v1009_v13 = vld [vmem:[%s1199_s3 + $0x30] sm:$0xff] (!%p289_p2)   ;;  %v1010_v14 = vld [vmem:[%s1199_s3 + $0x38] sm:$0xff] (!%p289_p2)  }
   0x8   : > { %935 = vmatpush3.bf16.msra.mxu1 (!%p289_p2), %v1003_v1  ;;  %v1011_v15 = vld [vmem:[%s1201_s5] sm:$0xff] (!%p289_p2)   ;;  %v1012_v16 = vld [vmem:[%s1201_s5 + $0x8] sm:$0xff] (!%p289_p2)   ;;  %v1013_v17 = vld [vmem:[%s1201_s5 + $0x10] sm:$0xff] (!%p289_p2)  }
   0x9   : > { %936 = vmatprep.subr.bf16.mxu1 (!%p289_p2), %v1004_v2  ;;  %954 = vmatprep.subr.bf16.mxu0 (!%p289_p2), %v1011_v15  ;;  %v1014_v18 = vld [vmem:[%s1201_s5 + $0x18] sm:$0xff] (!%p289_p2)   ;;  %v1015_v19 = vld [vmem:[%s1201_s5 + $0x20] sm:$0xff] (!%p289_p2)   ;;  %v1016_v20 = vld [vmem:[%s1201_s5 + $0x28] sm:$0xff] (!%p289_p2)  }
   0xa   : > { %v862_v21 = vld [vmem:[%s1198_s2] ss:$0 sm:$0xff] (!%p289_p2)  ;;  %v1017_v36 = vld [vmem:[%s1201_s5 + $0x30] sm:$0xff] (!%p289_p2)   ;;  %v1018_v37 = vld [vmem:[%s1201_s5 + $0x38] sm:$0xff] (!%p289_p2)  }
   0xb   : > { %v1019_v38 = vld [vmem:[%s1203_s7] sm:$0xff] (!%p289_p2)   ;;  %v1020_v39 = vld [vmem:[%s1203_s7 + $0x8] sm:$0xff] (!%p289_p2)   ;;  %v1021_v40 = vld [vmem:[%s1203_s7 + $0x10] sm:$0xff] (!%p289_p2)  }
   0xc   : > { %937 = vmatpush3.bf16.msra.mxu1 (!%p289_p2), %v1004_v2  ;;  %v1022_v41 = vld [vmem:[%s1203_s7 + $0x18] sm:$0xff] (!%p289_p2)   ;;  %v1023_v42 = vld [vmem:[%s1203_s7 + $0x20] sm:$0xff] (!%p289_p2)   ;;  %v1024_v43 = vld [vmem:[%s1203_s7 + $0x28] sm:$0xff] (!%p289_p2)  }
   0xd   : > { %s1207_s13 = smov (!%p325_p3, %s858_s13), 7  ;;  %938 = vmatprep.subr.bf16.mxu1 %v1005_v3  ;;  %v866_v44 = vld [vmem:[%s1200_s4] ss:$0 sm:$0xff]  ;;  %v1025_v59 = vld [vmem:[%s1203_s7 + $0x30] sm:$0xff]   ;;  %v1026_v60 = vld [vmem:[%s1203_s7 + $0x38] sm:$0xff]  }
   0xe   : > { %s859_s18 = sshll.u32 %s1207_s13, 3  ;;  %v875_v61 = vld [vmem:[%s1202_s6] ss:$0 sm:$0xff] }
   0xf   : > { %s328_s21 = scalar_lea.vmem %s1196_s0, %s859_s18  ;;  %s334_s22 = scalar_lea.vmem %s1205_s9, %s859_s18 }
  0x10   : > { %v337_v4 = vld [vmem:[%s328_s21] sm:$0xff]  ;;  %v338_v5 = vld [vmem:[%s328_s21 + $0x8] sm:$0xff]  ;;  %v339_v6 = vld [vmem:[%s328_s21 + $0x10] sm:$0xff]  ;;  %939 = vmatpush3.bf16.msra.mxu1 %v1005_v3 }
  0x11   : > { %v341_v7 = vpack.c.bf16 %v338_v5, %v337_v4  ;;  %v340_v8 = vld [vmem:[%s328_s21 + $0x18] sm:$0xff]  ;;  %940 = vmatprep.subr.bf16.mxu1 %v1006_v9 }
  0x12   : > { %v342_v10 = vpack.c.bf16 %v340_v8, %v339_v6 }
  0x13   : > { %930 = vmatprep.mubr.msk.bf16.mxu0 %vm358_vm0, %v341_v7 }
  0x14   : > { %931 = vmatmul.mubr.msk.bf16.vlgmr.msra.gmra.mrb[0].mxu0 %vm358_vm0, %v342_v10  ;;  %941 = vmatpush3.bf16.msra.mxu1 %v1006_v9 }
  0x15   : > { %942 = vmatprep.subr.bf16.mxu1 %v1007_v11  ;;  %955 = vmatpush3.bf16.msra.mxu0 %v1011_v15 }
  0x16   : > { %956 = vmatprep.subr.bf16.mxu0 %v1012_v16 }
  0x18   : > { %943 = vmatpush3.bf16.msra.mxu1 %v1007_v11 }
  0x19   : > { %944 = vmatprep.subr.bf16.mxu1 %v1008_v12  ;;  %957 = vmatpush3.bf16.msra.mxu0 %v1012_v16 }
  0x1a   : > { %958 = vmatprep.subr.bf16.mxu0 %v1013_v17 }
  0x1c   : > { %945 = vmatpush3.bf16.msra.mxu1 %v1008_v12  ;;  %v884_v12 = vld [vmem:[%s1204_s8] ss:$0 sm:$0xff] }
  0x1d   : > { %946 = vmatprep.subr.bf16.mxu1 %v1009_v13  ;;  %959 = vmatpush3.bf16.msra.mxu0 %v1013_v17 }
  0x1e   : > { %960 = vmatprep.subr.bf16.mxu0 %v1014_v18 }
  0x20   : > { %947 = vmatpush3.bf16.msra.mxu1 %v1009_v13 }
  0x21   : > { %948 = vmatprep.subr.bf16.mxu1 %v1010_v14  ;;  %961 = vmatpush3.bf16.msra.mxu0 %v1014_v18 }
  0x22   : > { %962 = vmatprep.subr.bf16.mxu0 %v1015_v19 }
  0x24   : > { %949 = vmatpush3.bf16.msra.mxu1 %v1010_v14 }
  0x25   : > { %963 = vmatpush3.bf16.msra.mxu0 %v1015_v19  ;;  %974 = vmatprep.subr.bf16.mxu1 %v1019_v38 }
  0x26   : > { %964 = vmatprep.subr.bf16.mxu0 %v1016_v20 }
  0x29   : > { %965 = vmatpush3.bf16.msra.mxu0 %v1016_v20 }
  0x2a   : > { %966 = vmatprep.subr.bf16.mxu0 %v1017_v36 }
  0x2d   : > { %967 = vmatpush3.bf16.msra.mxu0 %v1017_v36 }
  0x2e   : > { %968 = vmatprep.subr.bf16.mxu0 %v1018_v37 }
  0x31   : > { %969 = vmatpush3.bf16.msra.mxu0 %v1018_v37 }
  0xe7   : > { %v932_v22 = vpop.f32.mrb[0].mxu0 }
  0xe8   : > { %v408_v23 = vadd.f32 %v932_v22, %v862_v21  ;;  %v399_v24 = vpop.f32.mrb[1].mxu0 }
  0xe9   : > { %v400_v25 = vadd.f32 %v862_v21, %v399_v24  ;;  %v933_v26 = vpop.f32.mrb[2].mxu0 }
  0xea   : > { %v411_v27 = vadd.f32 %v933_v26, %v862_v21  ;;  %v402_v28 = vpop.f32.mrb[3].mxu0  ;;  %v416_v30 = vmax.f32 %v408_v23, 0.0 }
  0xeb   : > { %v403_v29 = vadd.f32 %v862_v21, %v402_v28  ;;  %v414_v32 = vmax.f32 %v400_v25, 0.0 }
  0xec   : > { %v417_v31 = vmax.f32 %v411_v27, 0.0 }
  0xed   : > { %v415_v33 = vmax.f32 %v403_v29, 0.0 }
  0xee   : > { %v419_v34 = vpack.c.bf16 %v417_v31, %v416_v30 }
  0xef   : > { %v418_v35 = vpack.c.bf16 %v415_v33, %v414_v32 }
  0xf1   : > { %950 = vmatprep.mubr.bf16.mxu1 %v418_v35 }
  0xf2   : > { %951 = vmatmul.mubr.bf16.vlgmr.msra.gmra.mrb[0].mxu1 %v419_v34 }
  0xf3   : > { %975 = vmatpush3.bf16.msra.mxu1 %v1019_v38 }
  0xf4   : > { %976 = vmatprep.subr.bf16.mxu1 %v1020_v39 }
  0xf7   : > { %977 = vmatpush3.bf16.msra.mxu1 %v1020_v39 }
  0xf8   : > { %978 = vmatprep.subr.bf16.mxu1 %v1021_v40 }
  0xfb   : > { %979 = vmatpush3.bf16.msra.mxu1 %v1021_v40 }
  0xfc   : > { %980 = vmatprep.subr.bf16.mxu1 %v1022_v41 }
  0xff   : > { %981 = vmatpush3.bf16.msra.mxu1 %v1022_v41 }
 0x100   : > { %982 = vmatprep.subr.bf16.mxu1 %v1023_v42 }
 0x103   : > { %983 = vmatpush3.bf16.msra.mxu1 %v1023_v42 }
 0x104   : > { %984 = vmatprep.subr.bf16.mxu1 %v1024_v43 }
 0x107   : > { %985 = vmatpush3.bf16.msra.mxu1 %v1024_v43 }
 0x108   : > { %986 = vmatprep.subr.bf16.mxu1 %v1025_v59 }
 0x10b   : > { %987 = vmatpush3.bf16.msra.mxu1 %v1025_v59 }
 0x10c   : > { %988 = vmatprep.subr.bf16.mxu1 %v1026_v60 }
 0x10f   : > { %989 = vmatpush3.bf16.msra.mxu1 %v1026_v60 }
 0x1c5   : > { %v952_v45 = vpop.f32.mrb[0].mxu1 }
 0x1c6   : > { %v534_v46 = vadd.f32 %v952_v45, %v866_v44  ;;  %v525_v47 = vpop.f32.mrb[1].mxu1 }
 0x1c7   : > { %v526_v48 = vadd.f32 %v866_v44, %v525_v47  ;;  %v953_v49 = vpop.f32.mrb[2].mxu1 }
 0x1c8   : > { %v537_v50 = vadd.f32 %v953_v49, %v866_v44  ;;  %v528_v51 = vpop.f32.mrb[3].mxu1  ;;  %v542_v53 = vmax.f32 %v534_v46, 0.0 }
 0x1c9   : > { %v529_v52 = vadd.f32 %v866_v44, %v528_v51  ;;  %v540_v55 = vmax.f32 %v526_v48, 0.0 }
 0x1ca   : > { %v543_v54 = vmax.f32 %v537_v50, 0.0 }
 0x1cb   : > { %v541_v56 = vmax.f32 %v529_v52, 0.0 }
 0x1cc   : > { %v545_v57 = vpack.c.bf16 %v543_v54, %v542_v53 }
 0x1cd   : > { %v544_v58 = vpack.c.bf16 %v541_v56, %v540_v55 }
 0x1cf   : > { %970 = vmatprep.mubr.bf16.mxu0 %v544_v58 }
 0x1d0   : > { %971 = vmatmul.mubr.bf16.vlgmr.msra.gmra.mrb[4].mxu0 %v545_v57 }
 0x2a3   : > { %v972_v62 = vpop.f32.mrb[4].mxu0 }
 0x2a4   : > { %v660_v63 = vadd.f32 %v972_v62, %v875_v61  ;;  %v651_v0 = vpop.f32.mrb[5].mxu0 }
 0x2a5   : > { %v652_v1 = vadd.f32 %v875_v61, %v651_v0  ;;  %v973_v2 = vpop.f32.mrb[6].mxu0 }
 0x2a6   : > { %v663_v3 = vadd.f32 %v973_v2, %v875_v61  ;;  %v654_v4 = vpop.f32.mrb[7].mxu0  ;;  %v668_v6 = vmax.f32 %v660_v63, 0.0 }
 0x2a7   : > { %v655_v5 = vadd.f32 %v875_v61, %v654_v4  ;;  %v666_v8 = vmax.f32 %v652_v1, 0.0 }
 0x2a8   : > { %v669_v7 = vmax.f32 %v663_v3, 0.0 }
 0x2a9   : > { %v667_v9 = vmax.f32 %v655_v5, 0.0 }
 0x2aa   : > { %v671_v10 = vpack.c.bf16 %v669_v7, %v668_v6 }
 0x2ab   : > { %v670_v11 = vpack.c.bf16 %v667_v9, %v666_v8 }
 0x2ad   : > { %990 = vmatprep.mubr.bf16.mxu1 %v670_v11 }
 0x2ae   : > { %991 = vmatmul.mubr.bf16.vlgmr.msra.gmra.mrb[4].mxu1 %v671_v10 }
 0x381   : > { %v992_v13 = vpop.f32.mrb[4].mxu1 }
 0x382   : > { %v777_v14 = vpop.f32.mrb[5].mxu1  ;;  %v786_v19 = vadd.f32 %v992_v13, %v884_v12 }
 0x383   : > { %v778_v15 = vadd.f32 %v884_v12, %v777_v14  ;;  %v993_v16 = vpop.f32.mrb[6].mxu1 }
 0x384   : > { %v780_v17 = vpop.f32.mrb[7].mxu1  ;;  %v789_v20 = vadd.f32 %v993_v16, %v884_v12  ;;  %795 = vst.msk [vmem:[%s334_s22 + $0x10] sm:$0xff] %vm792_vm1, %v786_v19 }
 0x385   : > { %793 = vst.msk [vmem:[%s334_s22] sm:$0xff] %vm792_vm1, %v778_v15  ;;  %v781_v18 = vadd.f32 %v884_v12, %v780_v17 }
 0x386   : > { %796 = vst.msk [vmem:[%s334_s22 + $0x18] sm:$0xff] %vm792_vm1, %v789_v20 }
 0x387   : > { %794 = vst.msk [vmem:[%s334_s22 + $0x8] sm:$0xff] %vm792_vm1, %v781_v18 }
 0x388 PF: > { %s19_s30 = sadd.s32 1, %s1033_s30  }
 0x389   : > { %p16_p4 = scmp.ge.s32.totalorder %s19_s30, 4  }
 0x38b   :  { %18 = sbr.rel (!%p16_p4) target bundleno = 1 (0x1), region = 86 }

</bundles_post_ra>
